<compile_context>
chip_gen: v7x
topology: tpu7x:2x2x1
jax: 0.10.0
libtpu: 0.0.40
codegen_flags: <defaults>
</compile_context>

<pallas_src>
import math
from itertools import permutations

import numpy as np
import jax
import jax.numpy as jnp
from jax.experimental import pallas as pl
from jax.experimental.pallas import tpu as pltpu

L_MAX = 2                                  # small L for the demo (original goes to L=10)
D = 2 * L_MAX + 1                          # padded edge length for every m-axis
FLAT = D * D * D                           # flattened CG tensor length
PAD = max(128, pl.cdiv(FLAT, 128) * 128)   # lane-dense row length (512 B per row)
_MAX_INFLIGHT = 8                          # bounded DMA / semaphore window


# ----------------------------------------------------------------------------
# Deterministic CG coefficient construction (replaces the .npz load)
# ----------------------------------------------------------------------------
def _fact(n):
    return math.factorial(n)


def _cg_coeff(l1, m1, l2, m2, l3, m3):
    """Standard Clebsch-Gordan coefficient <l1 m1 l2 m2 | l3 m3> (Racah)."""
    if m1 + m2 != m3:
        return 0.0
    if not (abs(l1 - l2) <= l3 <= l1 + l2):
        return 0.0
    pref = math.sqrt(
        (2 * l3 + 1)
        * _fact(l3 + l1 - l2) * _fact(l3 - l1 + l2) * _fact(l1 + l2 - l3)
        / _fact(l1 + l2 + l3 + 1)
    )
    pref *= math.sqrt(
        _fact(l3 + m3) * _fact(l3 - m3)
        * _fact(l1 - m1) * _fact(l1 + m1)
        * _fact(l2 - m2) * _fact(l2 + m2)
    )
    k_min = max(0, l2 - l3 - m1, l1 - l3 + m2)
    k_max = min(l1 + l2 - l3, l1 - m1, l2 + m2)
    s = 0.0
    for k in range(k_min, k_max + 1):
        s += (-1) ** k / (
            _fact(k) * _fact(l1 + l2 - l3 - k) * _fact(l1 - m1 - k)
            * _fact(l2 + m2 - k) * _fact(l3 - l2 + m1 + k) * _fact(l3 - l1 - m2 + k)
        )
    return pref * s


def _cg_tensor(l1, l2, l3):
    t = np.zeros((2 * l1 + 1, 2 * l2 + 1, 2 * l3 + 1), dtype=np.float64)
    for m1 in range(-l1, l1 + 1):
        for m2 in range(-l2, l2 + 1):
            for m3 in range(-l3, l3 + 1):
                t[m1 + l1, m2 + l2, m3 + l3] = _cg_coeff(l1, m1, l2, m2, l3, m3)
    return t


def build_buffers(l_max=L_MAX):
    """Mirror of the PyTorch __init__: one buffer per distinct permuted name.

    Same permutations((0,1,2)) iteration order and first-name-wins rule as the
    original `if name not in dir(self)` registration, so repeated-l triples
    (e.g. (1,1,2)) resolve to the same physical tensor.
    """
    keys = []
    for l1 in range(l_max + 1):
        for l2 in range(l1, l_max + 1):
            for l3 in range(l2, l_max + 1):
                if abs(l1 - l2) <= l3 <= l1 + l2:
                    keys.append((l1, l2, l3))
    buffers = {}
    for l123 in keys:
        t = _cg_tensor(*l123)
        for a, b, c in permutations((0, 1, 2)):
            name = (l123[a], l123[b], l123[c])
            if name not in buffers:              # "if name not in dir(self)"
                buffers[name] = np.ascontiguousarray(t.transpose(a, b, c))
    return buffers


# ----------------------------------------------------------------------------
# Pallas kernel: batched, data-dependent HBM->HBM row gather.
#
#   idx_ref  : SMEM, (K,) int32     -- scalar-prefetched row indices
#   table_ref: HBM (pl.ANY), (N, PAD) float32
#   out_ref  : HBM (pl.ANY), (K, PAD) float32
#   sems     : (DEPTH,) DMA semaphores (rotating window)
#
# Copies are issued with at most DEPTH in flight: before reusing a semaphore
# slot we wait on the copy that previously used it.  This keeps latency
# overlap while using O(1) semaphores/outstanding-DMA budget regardless of K.
# No VMEM buffer and no vector loads/stores are involved at all.
# ----------------------------------------------------------------------------
def _make_gather(k):
    depth = min(_MAX_INFLIGHT, k)

    def kernel(idx_ref, table_ref, out_ref, sems):
        def copy(i):
            return pltpu.make_async_copy(
                table_ref.at[idx_ref[i]],       # data-dependent source row
                out_ref.at[i],                  # contiguous dest row
                sems.at[i % depth],             # rotating semaphore slot
            )

        # Static unroll; K is bucketed to a small power of two so code size
        # stays bounded, and at most `depth` copies are ever in flight.
        for i in range(k):
            if i >= depth:
                copy(i - depth).wait()          # free the slot before reuse
            copy(i).start()
        for i in range(max(0, k - depth), k):
            copy(i).wait()

    grid_spec = pltpu.PrefetchScalarGridSpec(
        num_scalar_prefetch=1,
        grid=(1,),                                      # single step: DMAs overlap instead
        in_specs=[pl.BlockSpec(memory_space=pl.ANY)],   # table stays in HBM
        out_specs=pl.BlockSpec(memory_space=pl.ANY),    # output written by DMA
        scratch_shapes=[pltpu.SemaphoreType.DMA((depth,))],
    )
    return pl.pallas_call(
        kernel,
        out_shape=jax.ShapeDtypeStruct((k, PAD), jnp.float32),
        grid_spec=grid_spec,
        compiler_params=pltpu.CompilerParams(
            dimension_semantics=("arbitrary",),
        ),
        # Pure copy: tiny advisory cost so XLA doesn't over-weight this call.
        cost_estimate=pl.CostEstimate(
            flops=0, transcendentals=0, bytes_accessed=2 * k * PAD * 4),
    )


# ----------------------------------------------------------------------------
# Module wrapper
# ----------------------------------------------------------------------------
class ClebschGordan:
    def __init__(self):
        self._buffers = build_buffers()
        self._names = sorted(self._buffers.keys())
        self._index = {n: i for i, n in enumerate(self._names)}
        self._n_rows = len(self._names)

        # Lane-dense flattened table: row i = zero-padded (D,D,D) CG tensor,
        # flattened (C order) and padded to PAD lanes.
        table = np.zeros((self._n_rows, PAD), dtype=np.float32)
        for name, i in self._index.items():
            t = self._buffers[name]
            cube = np.zeros((D, D, D), dtype=np.float32)
            cube[: t.shape[0], : t.shape[1], : t.shape[2]] = t
            table[i, :FLAT] = cube.reshape(-1)
        self._table = jnp.asarray(table)        # (N, PAD) float32 in HBM

        self._gathers = {}                      # compiled kernel per bucketed K
        self._cache = {}                        # per-triple device-result cache

        # Warm the cache once: a single batched gather of every row, so the
        # steady-state forward() never touches the device path again.
        self._warm_cache()

    # -- kernel management ---------------------------------------------------
    def _get_gather(self, k):
        if k not in self._gathers:
            self._gathers[k] = jax.jit(_make_gather(k))
        return self._gathers[k]

    # -- host-side unpadding (numpy; no per-triple XLA dispatches) ------------
    @staticmethod
    def _unpad_np(row, l1, l2, l3):
        cube = row[:FLAT].reshape(D, D, D)
        return np.ascontiguousarray(cube[: 2 * l1 + 1, : 2 * l2 + 1, : 2 * l3 + 1])

    # -- batched lookup path ---------------------------------------------------
    def forward_batch(self, triples):
        """One pallas_call services the whole batch.

        Row indices are deduplicated, the batch size is bucketed to the next
        power of two (dummy index 0, extras dropped), and the resulting
        (K, PAD) slab is pulled to the host exactly once and unpadded with
        numpy before fanning the results back out.
        """
        rows = [self._index[t] for t in triples]
        uniq_rows = sorted(set(rows))
        pos = {r: j for j, r in enumerate(uniq_rows)}
        k = len(uniq_rows)

        kb = max(1, pl.next_power_of_2(k))        # bucketed batch size
        idx = np.zeros((kb,), dtype=np.int32)     # dummy rows gather index 0
        idx[:k] = np.asarray(uniq_rows, dtype=np.int32)
        # Validate host-side: an OOB index would be an OOB DMA source.
        assert (idx >= 0).all() and (idx < self._n_rows).all()

        padded = self._get_gather(kb)(jnp.asarray(idx), self._table)   # (kb, PAD)
        slab = np.asarray(jax.block_until_ready(padded))               # one host pull

        return [jnp.asarray(self._unpad_np(slab[pos[r]], *t))
                for r, t in zip(rows, triples)]

    # -- cache warm-up ---------------------------------------------------------
    def _warm_cache(self):
        outs = self.forward_batch(self._names)    # single K=N gather at init
        for name, out in zip(self._names, outs):
            self._cache[name] = out

    # -- PyTorch-style forward -------------------------------------------------
    def forward(self, l1, l2, l3):
        key = (l1, l2, l3)
        out = self._cache.get(key)
        if out is None:                            # should not happen after warm-up
            out = self.forward_batch([key])[0]
            self._cache[key] = out
        return out

    def __call__(self, l1, l2, l3):
        return self.forward(l1, l2, l3)


# ----------------------------------------------------------------------------
if __name__ == "__main__":
    cg = ClebschGordan()

    # Deterministic "example inputs": pick a (l1, l2, l3) triple via PRNGKey(0),
    # plus a few fixed triples for coverage (including a repeat to exercise dedup).
    key = jax.random.PRNGKey(0)
    pick = int(jax.random.randint(key, (), 0, len(cg._names)))
    triples = [cg._names[pick], (0, 0, 0), (1, 1, 2), (2, 1, 1), (1, 2, 2), (0, 0, 0)]

    ok = True

    # Batched path: a single pallas_call (dedup + bucketing + one host pull).
    outs = cg.forward_batch(triples)
    for (l1, l2, l3), out in zip(triples, outs):
        out = jax.block_until_ready(out)
        ref = cg._buffers[(l1, l2, l3)].astype(np.float32)
        if out.shape != ref.shape or not np.allclose(np.asarray(out), ref, atol=1e-6):
            ok = False
            print(f"MISMATCH (batched) for {(l1, l2, l3)}")

    # Single-lookup path (pure cache hit after init warm-up), matching the
    # PyTorch forward signature.
    for (l1, l2, l3) in triples:
        out = jax.block_until_ready(cg(l1, l2, l3))
        ref = cg._buffers[(l1, l2, l3)].astype(np.float32)
        if out.shape != ref.shape or not np.allclose(np.asarray(out), ref, atol=1e-6):
            ok = False
            print(f"MISMATCH (single) for {(l1, l2, l3)}")

    if ok:
        print("KERNEL_OK")
</pallas_src>

<mosaic_0001>
module attributes {stable_mosaic.version = 11 : i64} {
  func.func @kernel(%arg0: i32, %arg1: memref<16xi32, #tpu.memory_space<smem>>, %arg2: memref<15x128xf32, #tpu.memory_space<any>>, %arg3: memref<16x128xf32, #tpu.memory_space<any>>, %arg4: memref<8x!tpu.dma_semaphore, #tpu.memory_space<semaphore_mem>>) attributes {dimension_semantics = [#tpu.dimension_semantics<arbitrary>], iteration_bounds = array<i64: 1>, scalar_prefetch = 1 : i64, scratch_operands = 1 : i64, tpu.core_type = #tpu.core_type<tc>, window_params = [{}, {}]} {
    %c0 = arith.constant 0 : index
    %0 = memref.load %arg1[%c0] : memref<16xi32, #tpu.memory_space<smem>>
    %c0_i32 = arith.constant 0 : i32
    %c0_i32_0 = arith.constant 0 : i32
    %c0_i32_1 = arith.constant 0 : i32
    %1 = tpu.memref_slice %arg2[%0, %c0_i32_1] : memref<15x128xf32, #tpu.memory_space<any>> -> memref<1x128xf32, #tpu.memory_space<any>>
    %2 = tpu.memref_squeeze %1 : memref<1x128xf32, #tpu.memory_space<any>> -> memref<128xf32, #tpu.memory_space<any>>
    %c0_i32_2 = arith.constant 0 : i32
    %3 = tpu.memref_slice %arg3[%c0_i32, %c0_i32_2] : memref<16x128xf32, #tpu.memory_space<any>> -> memref<1x128xf32, #tpu.memory_space<any>>
    %4 = tpu.memref_squeeze %3 : memref<1x128xf32, #tpu.memory_space<any>> -> memref<128xf32, #tpu.memory_space<any>>
    %5 = tpu.memref_slice %arg4[%c0_i32_0] : memref<8x!tpu.dma_semaphore, #tpu.memory_space<semaphore_mem>> -> memref<1x!tpu.dma_semaphore, #tpu.memory_space<semaphore_mem>>
    %6 = tpu.memref_squeeze %5 : memref<1x!tpu.dma_semaphore, #tpu.memory_space<semaphore_mem>> -> memref<!tpu.dma_semaphore, #tpu.memory_space<semaphore_mem>>
    tpu.enqueue_dma source(%2 : memref<128xf32, #tpu.memory_space<any>>) target(%4 : memref<128xf32, #tpu.memory_space<any>>) target_semaphore(%6 : memref<!tpu.dma_semaphore, #tpu.memory_space<semaphore_mem>>)
    %c1 = arith.constant 1 : index
    %7 = memref.load %arg1[%c1] : memref<16xi32, #tpu.memory_space<smem>>
    %c1_i32 = arith.constant 1 : i32
    %c1_i32_3 = arith.constant 1 : i32
    %c0_i32_4 = arith.constant 0 : i32
    %8 = tpu.memref_slice %arg2[%7, %c0_i32_4] : memref<15x128xf32, #tpu.memory_space<any>> -> memref<1x128xf32, #tpu.memory_space<any>>
    %9 = tpu.memref_squeeze %8 : memref<1x128xf32, #tpu.memory_space<any>> -> memref<128xf32, #tpu.memory_space<any>>
    %c0_i32_5 = arith.constant 0 : i32
    %10 = tpu.memref_slice %arg3[%c1_i32, %c0_i32_5] : memref<16x128xf32, #tpu.memory_space<any>> -> memref<1x128xf32, #tpu.memory_space<any>>
    %11 = tpu.memref_squeeze %10 : memref<1x128xf32, #tpu.memory_space<any>> -> memref<128xf32, #tpu.memory_space<any>>
    %12 = tpu.memref_slice %arg4[%c1_i32_3] : memref<8x!tpu.dma_semaphore, #tpu.memory_space<semaphore_mem>> -> memref<1x!tpu.dma_semaphore, #tpu.memory_space<semaphore_mem>>
    %13 = tpu.memref_squeeze %12 : memref<1x!tpu.dma_semaphore, #tpu.memory_space<semaphore_mem>> -> memref<!tpu.dma_semaphore, #tpu.memory_space<semaphore_mem>>
    tpu.enqueue_dma source(%9 : memref<128xf32, #tpu.memory_space<any>>) target(%11 : memref<128xf32, #tpu.memory_space<any>>) target_semaphore(%13 : memref<!tpu.dma_semaphore, #tpu.memory_space<semaphore_mem>>)
    %c2 = arith.constant 2 : index
    %14 = memref.load %arg1[%c2] : memref<16xi32, #tpu.memory_space<smem>>
    %c2_i32 = arith.constant 2 : i32
    %c2_i32_6 = arith.constant 2 : i32
    %c0_i32_7 = arith.constant 0 : i32
    %15 = tpu.memref_slice %arg2[%14, %c0_i32_7] : memref<15x128xf32, #tpu.memory_space<any>> -> memref<1x128xf32, #tpu.memory_space<any>>
    %16 = tpu.memref_squeeze %15 : memref<1x128xf32, #tpu.memory_space<any>> -> memref<128xf32, #tpu.memory_space<any>>
    %c0_i32_8 = arith.constant 0 : i32
    %17 = tpu.memref_slice %arg3[%c2_i32, %c0_i32_8] : memref<16x128xf32, #tpu.memory_space<any>> -> memref<1x128xf32, #tpu.memory_space<any>>
    %18 = tpu.memref_squeeze %17 : memref<1x128xf32, #tpu.memory_space<any>> -> memref<128xf32, #tpu.memory_space<any>>
    %19 = tpu.memref_slice %arg4[%c2_i32_6] : memref<8x!tpu.dma_semaphore, #tpu.memory_space<semaphore_mem>> -> memref<1x!tpu.dma_semaphore, #tpu.memory_space<semaphore_mem>>
    %20 = tpu.memref_squeeze %19 : memref<1x!tpu.dma_semaphore, #tpu.memory_space<semaphore_mem>> -> memref<!tpu.dma_semaphore, #tpu.memory_space<semaphore_mem>>
    tpu.enqueue_dma source(%16 : memref<128xf32, #tpu.memory_space<any>>) target(%18 : memref<128xf32, #tpu.memory_space<any>>) target_semaphore(%20 : memref<!tpu.dma_semaphore, #tpu.memory_space<semaphore_mem>>)
    %c3 = arith.constant 3 : index
    %21 = memref.load %arg1[%c3] : memref<16xi32, #tpu.memory_space<smem>>
    %c3_i32 = arith.constant 3 : i32
    %c3_i32_9 = arith.constant 3 : i32
    %c0_i32_10 = arith.constant 0 : i32
    %22 = tpu.memref_slice %arg2[%21, %c0_i32_10] : memref<15x128xf32, #tpu.memory_space<any>> -> memref<1x128xf32, #tpu.memory_space<any>>
    %23 = tpu.memref_squeeze %22 : memref<1x128xf32, #tpu.memory_space<any>> -> memref<128xf32, #tpu.memory_space<any>>
    %c0_i32_11 = arith.constant 0 : i32
    %24 = tpu.memref_slice %arg3[%c3_i32, %c0_i32_11] : memref<16x128xf32, #tpu.memory_space<any>> -> memref<1x128xf32, #tpu.memory_space<any>>
    %25 = tpu.memref_squeeze %24 : memref<1x128xf32, #tpu.memory_space<any>> -> memref<128xf32, #tpu.memory_space<any>>
    %26 = tpu.memref_slice %arg4[%c3_i32_9] : memref<8x!tpu.dma_semaphore, #tpu.memory_space<semaphore_mem>> -> memref<1x!tpu.dma_semaphore, #tpu.memory_space<semaphore_mem>>
    %27 = tpu.memref_squeeze %26 : memref<1x!tpu.dma_semaphore, #tpu.memory_space<semaphore_mem>> -> memref<!tpu.dma_semaphore, #tpu.memory_space<semaphore_mem>>
    tpu.enqueue_dma source(%23 : memref<128xf32, #tpu.memory_space<any>>) target(%25 : memref<128xf32, #tpu.memory_space<any>>) target_semaphore(%27 : memref<!tpu.dma_semaphore, #tpu.memory_space<semaphore_mem>>)
    %c4 = arith.constant 4 : index
    %28 = memref.load %arg1[%c4] : memref<16xi32, #tpu.memory_space<smem>>
    %c4_i32 = arith.constant 4 : i32
    %c4_i32_12 = arith.constant 4 : i32
    %c0_i32_13 = arith.constant 0 : i32
    %29 = tpu.memref_slice %arg2[%28, %c0_i32_13] : memref<15x128xf32, #tpu.memory_space<any>> -> memref<1x128xf32, #tpu.memory_space<any>>
    %30 = tpu.memref_squeeze %29 : memref<1x128xf32, #tpu.memory_space<any>> -> memref<128xf32, #tpu.memory_space<any>>
    %c0_i32_14 = arith.constant 0 : i32
    %31 = tpu.memref_slice %arg3[%c4_i32, %c0_i32_14] : memref<16x128xf32, #tpu.memory_space<any>> -> memref<1x128xf32, #tpu.memory_space<any>>
    %32 = tpu.memref_squeeze %31 : memref<1x128xf32, #tpu.memory_space<any>> -> memref<128xf32, #tpu.memory_space<any>>
    %33 = tpu.memref_slice %arg4[%c4_i32_12] : memref<8x!tpu.dma_semaphore, #tpu.memory_space<semaphore_mem>> -> memref<1x!tpu.dma_semaphore, #tpu.memory_space<semaphore_mem>>
    %34 = tpu.memref_squeeze %33 : memref<1x!tpu.dma_semaphore, #tpu.memory_space<semaphore_mem>> -> memref<!tpu.dma_semaphore, #tpu.memory_space<semaphore_mem>>
    tpu.enqueue_dma source(%30 : memref<128xf32, #tpu.memory_space<any>>) target(%32 : memref<128xf32, #tpu.memory_space<any>>) target_semaphore(%34 : memref<!tpu.dma_semaphore, #tpu.memory_space<semaphore_mem>>)
    %c5 = arith.constant 5 : index
    %35 = memref.load %arg1[%c5] : memref<16xi32, #tpu.memory_space<smem>>
    %c5_i32 = arith.constant 5 : i32
    %c5_i32_15 = arith.constant 5 : i32
    %c0_i32_16 = arith.constant 0 : i32
    %36 = tpu.memref_slice %arg2[%35, %c0_i32_16] : memref<15x128xf32, #tpu.memory_space<any>> -> memref<1x128xf32, #tpu.memory_space<any>>
    %37 = tpu.memref_squeeze %36 : memref<1x128xf32, #tpu.memory_space<any>> -> memref<128xf32, #tpu.memory_space<any>>
    %c0_i32_17 = arith.constant 0 : i32
    %38 = tpu.memref_slice %arg3[%c5_i32, %c0_i32_17] : memref<16x128xf32, #tpu.memory_space<any>> -> memref<1x128xf32, #tpu.memory_space<any>>
    %39 = tpu.memref_squeeze %38 : memref<1x128xf32, #tpu.memory_space<any>> -> memref<128xf32, #tpu.memory_space<any>>
    %40 = tpu.memref_slice %arg4[%c5_i32_15] : memref<8x!tpu.dma_semaphore, #tpu.memory_space<semaphore_mem>> -> memref<1x!tpu.dma_semaphore, #tpu.memory_space<semaphore_mem>>
    %41 = tpu.memref_squeeze %40 : memref<1x!tpu.dma_semaphore, #tpu.memory_space<semaphore_mem>> -> memref<!tpu.dma_semaphore, #tpu.memory_space<semaphore_mem>>
    tpu.enqueue_dma source(%37 : memref<128xf32, #tpu.memory_space<any>>) target(%39 : memref<128xf32, #tpu.memory_space<any>>) target_semaphore(%41 : memref<!tpu.dma_semaphore, #tpu.memory_space<semaphore_mem>>)
    %c6 = arith.constant 6 : index
    %42 = memref.load %arg1[%c6] : memref<16xi32, #tpu.memory_space<smem>>
    %c6_i32 = arith.constant 6 : i32
    %c6_i32_18 = arith.constant 6 : i32
    %c0_i32_19 = arith.constant 0 : i32
    %43 = tpu.memref_slice %arg2[%42, %c0_i32_19] : memref<15x128xf32, #tpu.memory_space<any>> -> memref<1x128xf32, #tpu.memory_space<any>>
    %44 = tpu.memref_squeeze %43 : memref<1x128xf32, #tpu.memory_space<any>> -> memref<128xf32, #tpu.memory_space<any>>
    %c0_i32_20 = arith.constant 0 : i32
    %45 = tpu.memref_slice %arg3[%c6_i32, %c0_i32_20] : memref<16x128xf32, #tpu.memory_space<any>> -> memref<1x128xf32, #tpu.memory_space<any>>
    %46 = tpu.memref_squeeze %45 : memref<1x128xf32, #tpu.memory_space<any>> -> memref<128xf32, #tpu.memory_space<any>>
    %47 = tpu.memref_slice %arg4[%c6_i32_18] : memref<8x!tpu.dma_semaphore, #tpu.memory_space<semaphore_mem>> -> memref<1x!tpu.dma_semaphore, #tpu.memory_space<semaphore_mem>>
    %48 = tpu.memref_squeeze %47 : memref<1x!tpu.dma_semaphore, #tpu.memory_space<semaphore_mem>> -> memref<!tpu.dma_semaphore, #tpu.memory_space<semaphore_mem>>
    tpu.enqueue_dma source(%44 : memref<128xf32, #tpu.memory_space<any>>) target(%46 : memref<128xf32, #tpu.memory_space<any>>) target_semaphore(%48 : memref<!tpu.dma_semaphore, #tpu.memory_space<semaphore_mem>>)
    %c7 = arith.constant 7 : index
    %49 = memref.load %arg1[%c7] : memref<16xi32, #tpu.memory_space<smem>>
    %c7_i32 = arith.constant 7 : i32
    %c7_i32_21 = arith.constant 7 : i32
    %c0_i32_22 = arith.constant 0 : i32
    %50 = tpu.memref_slice %arg2[%49, %c0_i32_22] : memref<15x128xf32, #tpu.memory_space<any>> -> memref<1x128xf32, #tpu.memory_space<any>>
    %51 = tpu.memref_squeeze %50 : memref<1x128xf32, #tpu.memory_space<any>> -> memref<128xf32, #tpu.memory_space<any>>
    %c0_i32_23 = arith.constant 0 : i32
    %52 = tpu.memref_slice %arg3[%c7_i32, %c0_i32_23] : memref<16x128xf32, #tpu.memory_space<any>> -> memref<1x128xf32, #tpu.memory_space<any>>
    %53 = tpu.memref_squeeze %52 : memref<1x128xf32, #tpu.memory_space<any>> -> memref<128xf32, #tpu.memory_space<any>>
    %54 = tpu.memref_slice %arg4[%c7_i32_21] : memref<8x!tpu.dma_semaphore, #tpu.memory_space<semaphore_mem>> -> memref<1x!tpu.dma_semaphore, #tpu.memory_space<semaphore_mem>>
    %55 = tpu.memref_squeeze %54 : memref<1x!tpu.dma_semaphore, #tpu.memory_space<semaphore_mem>> -> memref<!tpu.dma_semaphore, #tpu.memory_space<semaphore_mem>>
    tpu.enqueue_dma source(%51 : memref<128xf32, #tpu.memory_space<any>>) target(%53 : memref<128xf32, #tpu.memory_space<any>>) target_semaphore(%55 : memref<!tpu.dma_semaphore, #tpu.memory_space<semaphore_mem>>)
    %c0_24 = arith.constant 0 : index
    %56 = memref.load %arg1[%c0_24] : memref<16xi32, #tpu.memory_space<smem>>
    %c0_i32_25 = arith.constant 0 : i32
    %c0_i32_26 = arith.constant 0 : i32
    %c0_i32_27 = arith.constant 0 : i32
    %57 = tpu.memref_slice %arg2[%56, %c0_i32_27] : memref<15x128xf32, #tpu.memory_space<any>> -> memref<1x128xf32, #tpu.memory_space<any>>
    %58 = tpu.memref_squeeze %57 : memref<1x128xf32, #tpu.memory_space<any>> -> memref<128xf32, #tpu.memory_space<any>>
    %c0_i32_28 = arith.constant 0 : i32
    %59 = tpu.memref_slice %arg3[%c0_i32_25, %c0_i32_28] : memref<16x128xf32, #tpu.memory_space<any>> -> memref<1x128xf32, #tpu.memory_space<any>>
    %60 = tpu.memref_squeeze %59 : memref<1x128xf32, #tpu.memory_space<any>> -> memref<128xf32, #tpu.memory_space<any>>
    %61 = tpu.memref_slice %arg4[%c0_i32_26] : memref<8x!tpu.dma_semaphore, #tpu.memory_space<semaphore_mem>> -> memref<1x!tpu.dma_semaphore, #tpu.memory_space<semaphore_mem>>
    %62 = tpu.memref_squeeze %61 : memref<1x!tpu.dma_semaphore, #tpu.memory_space<semaphore_mem>> -> memref<!tpu.dma_semaphore, #tpu.memory_space<semaphore_mem>>
    tpu.wait_dma2 semaphore(%62 : memref<!tpu.dma_semaphore, #tpu.memory_space<semaphore_mem>>) src(%58 : memref<128xf32, #tpu.memory_space<any>>) dst(%60 : memref<128xf32, #tpu.memory_space<any>>)
    %c8 = arith.constant 8 : index
    %63 = memref.load %arg1[%c8] : memref<16xi32, #tpu.memory_space<smem>>
    %c8_i32 = arith.constant 8 : i32
    %c0_i32_29 = arith.constant 0 : i32
    %c0_i32_30 = arith.constant 0 : i32
    %64 = tpu.memref_slice %arg2[%63, %c0_i32_30] : memref<15x128xf32, #tpu.memory_space<any>> -> memref<1x128xf32, #tpu.memory_space<any>>
    %65 = tpu.memref_squeeze %64 : memref<1x128xf32, #tpu.memory_space<any>> -> memref<128xf32, #tpu.memory_space<any>>
    %c0_i32_31 = arith.constant 0 : i32
    %66 = tpu.memref_slice %arg3[%c8_i32, %c0_i32_31] : memref<16x128xf32, #tpu.memory_space<any>> -> memref<1x128xf32, #tpu.memory_space<any>>
    %67 = tpu.memref_squeeze %66 : memref<1x128xf32, #tpu.memory_space<any>> -> memref<128xf32, #tpu.memory_space<any>>
    %68 = tpu.memref_slice %arg4[%c0_i32_29] : memref<8x!tpu.dma_semaphore, #tpu.memory_space<semaphore_mem>> -> memref<1x!tpu.dma_semaphore, #tpu.memory_space<semaphore_mem>>
    %69 = tpu.memref_squeeze %68 : memref<1x!tpu.dma_semaphore, #tpu.memory_space<semaphore_mem>> -> memref<!tpu.dma_semaphore, #tpu.memory_space<semaphore_mem>>
    tpu.enqueue_dma source(%65 : memref<128xf32, #tpu.memory_space<any>>) target(%67 : memref<128xf32, #tpu.memory_space<any>>) target_semaphore(%69 : memref<!tpu.dma_semaphore, #tpu.memory_space<semaphore_mem>>)
    %c1_32 = arith.constant 1 : index
    %70 = memref.load %arg1[%c1_32] : memref<16xi32, #tpu.memory_space<smem>>
    %c1_i32_33 = arith.constant 1 : i32
    %c1_i32_34 = arith.constant 1 : i32
    %c0_i32_35 = arith.constant 0 : i32
    %71 = tpu.memref_slice %arg2[%70, %c0_i32_35] : memref<15x128xf32, #tpu.memory_space<any>> -> memref<1x128xf32, #tpu.memory_space<any>>
    %72 = tpu.memref_squeeze %71 : memref<1x128xf32, #tpu.memory_space<any>> -> memref<128xf32, #tpu.memory_space<any>>
    %c0_i32_36 = arith.constant 0 : i32
    %73 = tpu.memref_slice %arg3[%c1_i32_33, %c0_i32_36] : memref<16x128xf32, #tpu.memory_space<any>> -> memref<1x128xf32, #tpu.memory_space<any>>
    %74 = tpu.memref_squeeze %73 : memref<1x128xf32, #tpu.memory_space<any>> -> memref<128xf32, #tpu.memory_space<any>>
    %75 = tpu.memref_slice %arg4[%c1_i32_34] : memref<8x!tpu.dma_semaphore, #tpu.memory_space<semaphore_mem>> -> memref<1x!tpu.dma_semaphore, #tpu.memory_space<semaphore_mem>>
    %76 = tpu.memref_squeeze %75 : memref<1x!tpu.dma_semaphore, #tpu.memory_space<semaphore_mem>> -> memref<!tpu.dma_semaphore, #tpu.memory_space<semaphore_mem>>
    tpu.wait_dma2 semaphore(%76 : memref<!tpu.dma_semaphore, #tpu.memory_space<semaphore_mem>>) src(%72 : memref<128xf32, #tpu.memory_space<any>>) dst(%74 : memref<128xf32, #tpu.memory_space<any>>)
    %c9 = arith.constant 9 : index
    %77 = memref.load %arg1[%c9] : memref<16xi32, #tpu.memory_space<smem>>
    %c9_i32 = arith.constant 9 : i32
    %c1_i32_37 = arith.constant 1 : i32
    %c0_i32_38 = arith.constant 0 : i32
    %78 = tpu.memref_slice %arg2[%77, %c0_i32_38] : memref<15x128xf32, #tpu.memory_space<any>> -> memref<1x128xf32, #tpu.memory_space<any>>
    %79 = tpu.memref_squeeze %78 : memref<1x128xf32, #tpu.memory_space<any>> -> memref<128xf32, #tpu.memory_space<any>>
    %c0_i32_39 = arith.constant 0 : i32
    %80 = tpu.memref_slice %arg3[%c9_i32, %c0_i32_39] : memref<16x128xf32, #tpu.memory_space<any>> -> memref<1x128xf32, #tpu.memory_space<any>>
    %81 = tpu.memref_squeeze %80 : memref<1x128xf32, #tpu.memory_space<any>> -> memref<128xf32, #tpu.memory_space<any>>
    %82 = tpu.memref_slice %arg4[%c1_i32_37] : memref<8x!tpu.dma_semaphore, #tpu.memory_space<semaphore_mem>> -> memref<1x!tpu.dma_semaphore, #tpu.memory_space<semaphore_mem>>
    %83 = tpu.memref_squeeze %82 : memref<1x!tpu.dma_semaphore, #tpu.memory_space<semaphore_mem>> -> memref<!tpu.dma_semaphore, #tpu.memory_space<semaphore_mem>>
    tpu.enqueue_dma source(%79 : memref<128xf32, #tpu.memory_space<any>>) target(%81 : memref<128xf32, #tpu.memory_space<any>>) target_semaphore(%83 : memref<!tpu.dma_semaphore, #tpu.memory_space<semaphore_mem>>)
    %c2_40 = arith.constant 2 : index
    %84 = memref.load %arg1[%c2_40] : memref<16xi32, #tpu.memory_space<smem>>
    %c2_i32_41 = arith.constant 2 : i32
    %c2_i32_42 = arith.constant 2 : i32
    %c0_i32_43 = arith.constant 0 : i32
    %85 = tpu.memref_slice %arg2[%84, %c0_i32_43] : memref<15x128xf32, #tpu.memory_space<any>> -> memref<1x128xf32, #tpu.memory_space<any>>
    %86 = tpu.memref_squeeze %85 : memref<1x128xf32, #tpu.memory_space<any>> -> memref<128xf32, #tpu.memory_space<any>>
    %c0_i32_44 = arith.constant 0 : i32
    %87 = tpu.memref_slice %arg3[%c2_i32_41, %c0_i32_44] : memref<16x128xf32, #tpu.memory_space<any>> -> memref<1x128xf32, #tpu.memory_space<any>>
    %88 = tpu.memref_squeeze %87 : memref<1x128xf32, #tpu.memory_space<any>> -> memref<128xf32, #tpu.memory_space<any>>
    %89 = tpu.memref_slice %arg4[%c2_i32_42] : memref<8x!tpu.dma_semaphore, #tpu.memory_space<semaphore_mem>> -> memref<1x!tpu.dma_semaphore, #tpu.memory_space<semaphore_mem>>
    %90 = tpu.memref_squeeze %89 : memref<1x!tpu.dma_semaphore, #tpu.memory_space<semaphore_mem>> -> memref<!tpu.dma_semaphore, #tpu.memory_space<semaphore_mem>>
    tpu.wait_dma2 semaphore(%90 : memref<!tpu.dma_semaphore, #tpu.memory_space<semaphore_mem>>) src(%86 : memref<128xf32, #tpu.memory_space<any>>) dst(%88 : memref<128xf32, #tpu.memory_space<any>>)
    %c10 = arith.constant 10 : index
    %91 = memref.load %arg1[%c10] : memref<16xi32, #tpu.memory_space<smem>>
    %c10_i32 = arith.constant 10 : i32
    %c2_i32_45 = arith.constant 2 : i32
    %c0_i32_46 = arith.constant 0 : i32
    %92 = tpu.memref_slice %arg2[%91, %c0_i32_46] : memref<15x128xf32, #tpu.memory_space<any>> -> memref<1x128xf32, #tpu.memory_space<any>>
    %93 = tpu.memref_squeeze %92 : memref<1x128xf32, #tpu.memory_space<any>> -> memref<128xf32, #tpu.memory_space<any>>
    %c0_i32_47 = arith.constant 0 : i32
    %94 = tpu.memref_slice %arg3[%c10_i32, %c0_i32_47] : memref<16x128xf32, #tpu.memory_space<any>> -> memref<1x128xf32, #tpu.memory_space<any>>
    %95 = tpu.memref_squeeze %94 : memref<1x128xf32, #tpu.memory_space<any>> -> memref<128xf32, #tpu.memory_space<any>>
    %96 = tpu.memref_slice %arg4[%c2_i32_45] : memref<8x!tpu.dma_semaphore, #tpu.memory_space<semaphore_mem>> -> memref<1x!tpu.dma_semaphore, #tpu.memory_space<semaphore_mem>>
    %97 = tpu.memref_squeeze %96 : memref<1x!tpu.dma_semaphore, #tpu.memory_space<semaphore_mem>> -> memref<!tpu.dma_semaphore, #tpu.memory_space<semaphore_mem>>
    tpu.enqueue_dma source(%93 : memref<128xf32, #tpu.memory_space<any>>) target(%95 : memref<128xf32, #tpu.memory_space<any>>) target_semaphore(%97 : memref<!tpu.dma_semaphore, #tpu.memory_space<semaphore_mem>>)
    %c3_48 = arith.constant 3 : index
    %98 = memref.load %arg1[%c3_48] : memref<16xi32, #tpu.memory_space<smem>>
    %c3_i32_49 = arith.constant 3 : i32
    %c3_i32_50 = arith.constant 3 : i32
    %c0_i32_51 = arith.constant 0 : i32
    %99 = tpu.memref_slice %arg2[%98, %c0_i32_51] : memref<15x128xf32, #tpu.memory_space<any>> -> memref<1x128xf32, #tpu.memory_space<any>>
    %100 = tpu.memref_squeeze %99 : memref<1x128xf32, #tpu.memory_space<any>> -> memref<128xf32, #tpu.memory_space<any>>
    %c0_i32_52 = arith.constant 0 : i32
    %101 = tpu.memref_slice %arg3[%c3_i32_49, %c0_i32_52] : memref<16x128xf32, #tpu.memory_space<any>> -> memref<1x128xf32, #tpu.memory_space<any>>
    %102 = tpu.memref_squeeze %101 : memref<1x128xf32, #tpu.memory_space<any>> -> memref<128xf32, #tpu.memory_space<any>>
    %103 = tpu.memref_slice %arg4[%c3_i32_50] : memref<8x!tpu.dma_semaphore, #tpu.memory_space<semaphore_mem>> -> memref<1x!tpu.dma_semaphore, #tpu.memory_space<semaphore_mem>>
    %104 = tpu.memref_squeeze %103 : memref<1x!tpu.dma_semaphore, #tpu.memory_space<semaphore_mem>> -> memref<!tpu.dma_semaphore, #tpu.memory_space<semaphore_mem>>
    tpu.wait_dma2 semaphore(%104 : memref<!tpu.dma_semaphore, #tpu.memory_space<semaphore_mem>>) src(%100 : memref<128xf32, #tpu.memory_space<any>>) dst(%102 : memref<128xf32, #tpu.memory_space<any>>)
    %c11 = arith.constant 11 : index
    %105 = memref.load %arg1[%c11] : memref<16xi32, #tpu.memory_space<smem>>
    %c11_i32 = arith.constant 11 : i32
    %c3_i32_53 = arith.constant 3 : i32
    %c0_i32_54 = arith.constant 0 : i32
    %106 = tpu.memref_slice %arg2[%105, %c0_i32_54] : memref<15x128xf32, #tpu.memory_space<any>> -> memref<1x128xf32, #tpu.memory_space<any>>
    %107 = tpu.memref_squeeze %106 : memref<1x128xf32, #tpu.memory_space<any>> -> memref<128xf32, #tpu.memory_space<any>>
    %c0_i32_55 = arith.constant 0 : i32
    %108 = tpu.memref_slice %arg3[%c11_i32, %c0_i32_55] : memref<16x128xf32, #tpu.memory_space<any>> -> memref<1x128xf32, #tpu.memory_space<any>>
    %109 = tpu.memref_squeeze %108 : memref<1x128xf32, #tpu.memory_space<any>> -> memref<128xf32, #tpu.memory_space<any>>
    %110 = tpu.memref_slice %arg4[%c3_i32_53] : memref<8x!tpu.dma_semaphore, #tpu.memory_space<semaphore_mem>> -> memref<1x!tpu.dma_semaphore, #tpu.memory_space<semaphore_mem>>
    %111 = tpu.memref_squeeze %110 : memref<1x!tpu.dma_semaphore, #tpu.memory_space<semaphore_mem>> -> memref<!tpu.dma_semaphore, #tpu.memory_space<semaphore_mem>>
    tpu.enqueue_dma source(%107 : memref<128xf32, #tpu.memory_space<any>>) target(%109 : memref<128xf32, #tpu.memory_space<any>>) target_semaphore(%111 : memref<!tpu.dma_semaphore, #tpu.memory_space<semaphore_mem>>)
    %c4_56 = arith.constant 4 : index
    %112 = memref.load %arg1[%c4_56] : memref<16xi32, #tpu.memory_space<smem>>
    %c4_i32_57 = arith.constant 4 : i32
    %c4_i32_58 = arith.constant 4 : i32
    %c0_i32_59 = arith.constant 0 : i32
    %113 = tpu.memref_slice %arg2[%112, %c0_i32_59] : memref<15x128xf32, #tpu.memory_space<any>> -> memref<1x128xf32, #tpu.memory_space<any>>
    %114 = tpu.memref_squeeze %113 : memref<1x128xf32, #tpu.memory_space<any>> -> memref<128xf32, #tpu.memory_space<any>>
    %c0_i32_60 = arith.constant 0 : i32
    %115 = tpu.memref_slice %arg3[%c4_i32_57, %c0_i32_60] : memref<16x128xf32, #tpu.memory_space<any>> -> memref<1x128xf32, #tpu.memory_space<any>>
    %116 = tpu.memref_squeeze %115 : memref<1x128xf32, #tpu.memory_space<any>> -> memref<128xf32, #tpu.memory_space<any>>
    %117 = tpu.memref_slice %arg4[%c4_i32_58] : memref<8x!tpu.dma_semaphore, #tpu.memory_space<semaphore_mem>> -> memref<1x!tpu.dma_semaphore, #tpu.memory_space<semaphore_mem>>
    %118 = tpu.memref_squeeze %117 : memref<1x!tpu.dma_semaphore, #tpu.memory_space<semaphore_mem>> -> memref<!tpu.dma_semaphore, #tpu.memory_space<semaphore_mem>>
    tpu.wait_dma2 semaphore(%118 : memref<!tpu.dma_semaphore, #tpu.memory_space<semaphore_mem>>) src(%114 : memref<128xf32, #tpu.memory_space<any>>) dst(%116 : memref<128xf32, #tpu.memory_space<any>>)
    %c12 = arith.constant 12 : index
    %119 = memref.load %arg1[%c12] : memref<16xi32, #tpu.memory_space<smem>>
    %c12_i32 = arith.constant 12 : i32
    %c4_i32_61 = arith.constant 4 : i32
    %c0_i32_62 = arith.constant 0 : i32
    %120 = tpu.memref_slice %arg2[%119, %c0_i32_62] : memref<15x128xf32, #tpu.memory_space<any>> -> memref<1x128xf32, #tpu.memory_space<any>>
    %121 = tpu.memref_squeeze %120 : memref<1x128xf32, #tpu.memory_space<any>> -> memref<128xf32, #tpu.memory_space<any>>
    %c0_i32_63 = arith.constant 0 : i32
    %122 = tpu.memref_slice %arg3[%c12_i32, %c0_i32_63] : memref<16x128xf32, #tpu.memory_space<any>> -> memref<1x128xf32, #tpu.memory_space<any>>
    %123 = tpu.memref_squeeze %122 : memref<1x128xf32, #tpu.memory_space<any>> -> memref<128xf32, #tpu.memory_space<any>>
    %124 = tpu.memref_slice %arg4[%c4_i32_61] : memref<8x!tpu.dma_semaphore, #tpu.memory_space<semaphore_mem>> -> memref<1x!tpu.dma_semaphore, #tpu.memory_space<semaphore_mem>>
    %125 = tpu.memref_squeeze %124 : memref<1x!tpu.dma_semaphore, #tpu.memory_space<semaphore_mem>> -> memref<!tpu.dma_semaphore, #tpu.memory_space<semaphore_mem>>
    tpu.enqueue_dma source(%121 : memref<128xf32, #tpu.memory_space<any>>) target(%123 : memref<128xf32, #tpu.memory_space<any>>) target_semaphore(%125 : memref<!tpu.dma_semaphore, #tpu.memory_space<semaphore_mem>>)
    %c5_64 = arith.constant 5 : index
    %126 = memref.load %arg1[%c5_64] : memref<16xi32, #tpu.memory_space<smem>>
    %c5_i32_65 = arith.constant 5 : i32
    %c5_i32_66 = arith.constant 5 : i32
    %c0_i32_67 = arith.constant 0 : i32
    %127 = tpu.memref_slice %arg2[%126, %c0_i32_67] : memref<15x128xf32, #tpu.memory_space<any>> -> memref<1x128xf32, #tpu.memory_space<any>>
    %128 = tpu.memref_squeeze %127 : memref<1x128xf32, #tpu.memory_space<any>> -> memref<128xf32, #tpu.memory_space<any>>
    %c0_i32_68 = arith.constant 0 : i32
    %129 = tpu.memref_slice %arg3[%c5_i32_65, %c0_i32_68] : memref<16x128xf32, #tpu.memory_space<any>> -> memref<1x128xf32, #tpu.memory_space<any>>
    %130 = tpu.memref_squeeze %129 : memref<1x128xf32, #tpu.memory_space<any>> -> memref<128xf32, #tpu.memory_space<any>>
    %131 = tpu.memref_slice %arg4[%c5_i32_66] : memref<8x!tpu.dma_semaphore, #tpu.memory_space<semaphore_mem>> -> memref<1x!tpu.dma_semaphore, #tpu.memory_space<semaphore_mem>>
    %132 = tpu.memref_squeeze %131 : memref<1x!tpu.dma_semaphore, #tpu.memory_space<semaphore_mem>> -> memref<!tpu.dma_semaphore, #tpu.memory_space<semaphore_mem>>
    tpu.wait_dma2 semaphore(%132 : memref<!tpu.dma_semaphore, #tpu.memory_space<semaphore_mem>>) src(%128 : memref<128xf32, #tpu.memory_space<any>>) dst(%130 : memref<128xf32, #tpu.memory_space<any>>)
    %c13 = arith.constant 13 : index
    %133 = memref.load %arg1[%c13] : memref<16xi32, #tpu.memory_space<smem>>
    %c13_i32 = arith.constant 13 : i32
    %c5_i32_69 = arith.constant 5 : i32
    %c0_i32_70 = arith.constant 0 : i32
    %134 = tpu.memref_slice %arg2[%133, %c0_i32_70] : memref<15x128xf32, #tpu.memory_space<any>> -> memref<1x128xf32, #tpu.memory_space<any>>
    %135 = tpu.memref_squeeze %134 : memref<1x128xf32, #tpu.memory_space<any>> -> memref<128xf32, #tpu.memory_space<any>>
    %c0_i32_71 = arith.constant 0 : i32
    %136 = tpu.memref_slice %arg3[%c13_i32, %c0_i32_71] : memref<16x128xf32, #tpu.memory_space<any>> -> memref<1x128xf32, #tpu.memory_space<any>>
    %137 = tpu.memref_squeeze %136 : memref<1x128xf32, #tpu.memory_space<any>> -> memref<128xf32, #tpu.memory_space<any>>
    %138 = tpu.memref_slice %arg4[%c5_i32_69] : memref<8x!tpu.dma_semaphore, #tpu.memory_space<semaphore_mem>> -> memref<1x!tpu.dma_semaphore, #tpu.memory_space<semaphore_mem>>
    %139 = tpu.memref_squeeze %138 : memref<1x!tpu.dma_semaphore, #tpu.memory_space<semaphore_mem>> -> memref<!tpu.dma_semaphore, #tpu.memory_space<semaphore_mem>>
    tpu.enqueue_dma source(%135 : memref<128xf32, #tpu.memory_space<any>>) target(%137 : memref<128xf32, #tpu.memory_space<any>>) target_semaphore(%139 : memref<!tpu.dma_semaphore, #tpu.memory_space<semaphore_mem>>)
    %c6_72 = arith.constant 6 : index
    %140 = memref.load %arg1[%c6_72] : memref<16xi32, #tpu.memory_space<smem>>
    %c6_i32_73 = arith.constant 6 : i32
    %c6_i32_74 = arith.constant 6 : i32
    %c0_i32_75 = arith.constant 0 : i32
    %141 = tpu.memref_slice %arg2[%140, %c0_i32_75] : memref<15x128xf32, #tpu.memory_space<any>> -> memref<1x128xf32, #tpu.memory_space<any>>
    %142 = tpu.memref_squeeze %141 : memref<1x128xf32, #tpu.memory_space<any>> -> memref<128xf32, #tpu.memory_space<any>>
    %c0_i32_76 = arith.constant 0 : i32
    %143 = tpu.memref_slice %arg3[%c6_i32_73, %c0_i32_76] : memref<16x128xf32, #tpu.memory_space<any>> -> memref<1x128xf32, #tpu.memory_space<any>>
    %144 = tpu.memref_squeeze %143 : memref<1x128xf32, #tpu.memory_space<any>> -> memref<128xf32, #tpu.memory_space<any>>
    %145 = tpu.memref_slice %arg4[%c6_i32_74] : memref<8x!tpu.dma_semaphore, #tpu.memory_space<semaphore_mem>> -> memref<1x!tpu.dma_semaphore, #tpu.memory_space<semaphore_mem>>
    %146 = tpu.memref_squeeze %145 : memref<1x!tpu.dma_semaphore, #tpu.memory_space<semaphore_mem>> -> memref<!tpu.dma_semaphore, #tpu.memory_space<semaphore_mem>>
    tpu.wait_dma2 semaphore(%146 : memref<!tpu.dma_semaphore, #tpu.memory_space<semaphore_mem>>) src(%142 : memref<128xf32, #tpu.memory_space<any>>) dst(%144 : memref<128xf32, #tpu.memory_space<any>>)
    %c14 = arith.constant 14 : index
    %147 = memref.load %arg1[%c14] : memref<16xi32, #tpu.memory_space<smem>>
    %c14_i32 = arith.constant 14 : i32
    %c6_i32_77 = arith.constant 6 : i32
    %c0_i32_78 = arith.constant 0 : i32
    %148 = tpu.memref_slice %arg2[%147, %c0_i32_78] : memref<15x128xf32, #tpu.memory_space<any>> -> memref<1x128xf32, #tpu.memory_space<any>>
    %149 = tpu.memref_squeeze %148 : memref<1x128xf32, #tpu.memory_space<any>> -> memref<128xf32, #tpu.memory_space<any>>
    %c0_i32_79 = arith.constant 0 : i32
    %150 = tpu.memref_slice %arg3[%c14_i32, %c0_i32_79] : memref<16x128xf32, #tpu.memory_space<any>> -> memref<1x128xf32, #tpu.memory_space<any>>
    %151 = tpu.memref_squeeze %150 : memref<1x128xf32, #tpu.memory_space<any>> -> memref<128xf32, #tpu.memory_space<any>>
    %152 = tpu.memref_slice %arg4[%c6_i32_77] : memref<8x!tpu.dma_semaphore, #tpu.memory_space<semaphore_mem>> -> memref<1x!tpu.dma_semaphore, #tpu.memory_space<semaphore_mem>>
    %153 = tpu.memref_squeeze %152 : memref<1x!tpu.dma_semaphore, #tpu.memory_space<semaphore_mem>> -> memref<!tpu.dma_semaphore, #tpu.memory_space<semaphore_mem>>
    tpu.enqueue_dma source(%149 : memref<128xf32, #tpu.memory_space<any>>) target(%151 : memref<128xf32, #tpu.memory_space<any>>) target_semaphore(%153 : memref<!tpu.dma_semaphore, #tpu.memory_space<semaphore_mem>>)
    %c7_80 = arith.constant 7 : index
    %154 = memref.load %arg1[%c7_80] : memref<16xi32, #tpu.memory_space<smem>>
    %c7_i32_81 = arith.constant 7 : i32
    %c7_i32_82 = arith.constant 7 : i32
    %c0_i32_83 = arith.constant 0 : i32
    %155 = tpu.memref_slice %arg2[%154, %c0_i32_83] : memref<15x128xf32, #tpu.memory_space<any>> -> memref<1x128xf32, #tpu.memory_space<any>>
    %156 = tpu.memref_squeeze %155 : memref<1x128xf32, #tpu.memory_space<any>> -> memref<128xf32, #tpu.memory_space<any>>
    %c0_i32_84 = arith.constant 0 : i32
    %157 = tpu.memref_slice %arg3[%c7_i32_81, %c0_i32_84] : memref<16x128xf32, #tpu.memory_space<any>> -> memref<1x128xf32, #tpu.memory_space<any>>
    %158 = tpu.memref_squeeze %157 : memref<1x128xf32, #tpu.memory_space<any>> -> memref<128xf32, #tpu.memory_space<any>>
    %159 = tpu.memref_slice %arg4[%c7_i32_82] : memref<8x!tpu.dma_semaphore, #tpu.memory_space<semaphore_mem>> -> memref<1x!tpu.dma_semaphore, #tpu.memory_space<semaphore_mem>>
    %160 = tpu.memref_squeeze %159 : memref<1x!tpu.dma_semaphore, #tpu.memory_space<semaphore_mem>> -> memref<!tpu.dma_semaphore, #tpu.memory_space<semaphore_mem>>
    tpu.wait_dma2 semaphore(%160 : memref<!tpu.dma_semaphore, #tpu.memory_space<semaphore_mem>>) src(%156 : memref<128xf32, #tpu.memory_space<any>>) dst(%158 : memref<128xf32, #tpu.memory_space<any>>)
    %c15 = arith.constant 15 : index
    %161 = memref.load %arg1[%c15] : memref<16xi32, #tpu.memory_space<smem>>
    %c15_i32 = arith.constant 15 : i32
    %c7_i32_85 = arith.constant 7 : i32
    %c0_i32_86 = arith.constant 0 : i32
    %162 = tpu.memref_slice %arg2[%161, %c0_i32_86] : memref<15x128xf32, #tpu.memory_space<any>> -> memref<1x128xf32, #tpu.memory_space<any>>
    %163 = tpu.memref_squeeze %162 : memref<1x128xf32, #tpu.memory_space<any>> -> memref<128xf32, #tpu.memory_space<any>>
    %c0_i32_87 = arith.constant 0 : i32
    %164 = tpu.memref_slice %arg3[%c15_i32, %c0_i32_87] : memref<16x128xf32, #tpu.memory_space<any>> -> memref<1x128xf32, #tpu.memory_space<any>>
    %165 = tpu.memref_squeeze %164 : memref<1x128xf32, #tpu.memory_space<any>> -> memref<128xf32, #tpu.memory_space<any>>
    %166 = tpu.memref_slice %arg4[%c7_i32_85] : memref<8x!tpu.dma_semaphore, #tpu.memory_space<semaphore_mem>> -> memref<1x!tpu.dma_semaphore, #tpu.memory_space<semaphore_mem>>
    %167 = tpu.memref_squeeze %166 : memref<1x!tpu.dma_semaphore, #tpu.memory_space<semaphore_mem>> -> memref<!tpu.dma_semaphore, #tpu.memory_space<semaphore_mem>>
    tpu.enqueue_dma source(%163 : memref<128xf32, #tpu.memory_space<any>>) target(%165 : memref<128xf32, #tpu.memory_space<any>>) target_semaphore(%167 : memref<!tpu.dma_semaphore, #tpu.memory_space<semaphore_mem>>)
    %c8_88 = arith.constant 8 : index
    %168 = memref.load %arg1[%c8_88] : memref<16xi32, #tpu.memory_space<smem>>
    %c8_i32_89 = arith.constant 8 : i32
    %c0_i32_90 = arith.constant 0 : i32
    %c0_i32_91 = arith.constant 0 : i32
    %169 = tpu.memref_slice %arg2[%168, %c0_i32_91] : memref<15x128xf32, #tpu.memory_space<any>> -> memref<1x128xf32, #tpu.memory_space<any>>
    %170 = tpu.memref_squeeze %169 : memref<1x128xf32, #tpu.memory_space<any>> -> memref<128xf32, #tpu.memory_space<any>>
    %c0_i32_92 = arith.constant 0 : i32
    %171 = tpu.memref_slice %arg3[%c8_i32_89, %c0_i32_92] : memref<16x128xf32, #tpu.memory_space<any>> -> memref<1x128xf32, #tpu.memory_space<any>>
    %172 = tpu.memref_squeeze %171 : memref<1x128xf32, #tpu.memory_space<any>> -> memref<128xf32, #tpu.memory_space<any>>
    %173 = tpu.memref_slice %arg4[%c0_i32_90] : memref<8x!tpu.dma_semaphore, #tpu.memory_space<semaphore_mem>> -> memref<1x!tpu.dma_semaphore, #tpu.memory_space<semaphore_mem>>
    %174 = tpu.memref_squeeze %173 : memref<1x!tpu.dma_semaphore, #tpu.memory_space<semaphore_mem>> -> memref<!tpu.dma_semaphore, #tpu.memory_space<semaphore_mem>>
    tpu.wait_dma2 semaphore(%174 : memref<!tpu.dma_semaphore, #tpu.memory_space<semaphore_mem>>) src(%170 : memref<128xf32, #tpu.memory_space<any>>) dst(%172 : memref<128xf32, #tpu.memory_space<any>>)
    %c9_93 = arith.constant 9 : index
    %175 = memref.load %arg1[%c9_93] : memref<16xi32, #tpu.memory_space<smem>>
    %c9_i32_94 = arith.constant 9 : i32
    %c1_i32_95 = arith.constant 1 : i32
    %c0_i32_96 = arith.constant 0 : i32
    %176 = tpu.memref_slice %arg2[%175, %c0_i32_96] : memref<15x128xf32, #tpu.memory_space<any>> -> memref<1x128xf32, #tpu.memory_space<any>>
    %177 = tpu.memref_squeeze %176 : memref<1x128xf32, #tpu.memory_space<any>> -> memref<128xf32, #tpu.memory_space<any>>
    %c0_i32_97 = arith.constant 0 : i32
    %178 = tpu.memref_slice %arg3[%c9_i32_94, %c0_i32_97] : memref<16x128xf32, #tpu.memory_space<any>> -> memref<1x128xf32, #tpu.memory_space<any>>
    %179 = tpu.memref_squeeze %178 : memref<1x128xf32, #tpu.memory_space<any>> -> memref<128xf32, #tpu.memory_space<any>>
    %180 = tpu.memref_slice %arg4[%c1_i32_95] : memref<8x!tpu.dma_semaphore, #tpu.memory_space<semaphore_mem>> -> memref<1x!tpu.dma_semaphore, #tpu.memory_space<semaphore_mem>>
    %181 = tpu.memref_squeeze %180 : memref<1x!tpu.dma_semaphore, #tpu.memory_space<semaphore_mem>> -> memref<!tpu.dma_semaphore, #tpu.memory_space<semaphore_mem>>
    tpu.wait_dma2 semaphore(%181 : memref<!tpu.dma_semaphore, #tpu.memory_space<semaphore_mem>>) src(%177 : memref<128xf32, #tpu.memory_space<any>>) dst(%179 : memref<128xf32, #tpu.memory_space<any>>)
    %c10_98 = arith.constant 10 : index
    %182 = memref.load %arg1[%c10_98] : memref<16xi32, #tpu.memory_space<smem>>
    %c10_i32_99 = arith.constant 10 : i32
    %c2_i32_100 = arith.constant 2 : i32
    %c0_i32_101 = arith.constant 0 : i32
    %183 = tpu.memref_slice %arg2[%182, %c0_i32_101] : memref<15x128xf32, #tpu.memory_space<any>> -> memref<1x128xf32, #tpu.memory_space<any>>
    %184 = tpu.memref_squeeze %183 : memref<1x128xf32, #tpu.memory_space<any>> -> memref<128xf32, #tpu.memory_space<any>>
    %c0_i32_102 = arith.constant 0 : i32
    %185 = tpu.memref_slice %arg3[%c10_i32_99, %c0_i32_102] : memref<16x128xf32, #tpu.memory_space<any>> -> memref<1x128xf32, #tpu.memory_space<any>>
    %186 = tpu.memref_squeeze %185 : memref<1x128xf32, #tpu.memory_space<any>> -> memref<128xf32, #tpu.memory_space<any>>
    %187 = tpu.memref_slice %arg4[%c2_i32_100] : memref<8x!tpu.dma_semaphore, #tpu.memory_space<semaphore_mem>> -> memref<1x!tpu.dma_semaphore, #tpu.memory_space<semaphore_mem>>
    %188 = tpu.memref_squeeze %187 : memref<1x!tpu.dma_semaphore, #tpu.memory_space<semaphore_mem>> -> memref<!tpu.dma_semaphore, #tpu.memory_space<semaphore_mem>>
    tpu.wait_dma2 semaphore(%188 : memref<!tpu.dma_semaphore, #tpu.memory_space<semaphore_mem>>) src(%184 : memref<128xf32, #tpu.memory_space<any>>) dst(%186 : memref<128xf32, #tpu.memory_space<any>>)
    %c11_103 = arith.constant 11 : index
    %189 = memref.load %arg1[%c11_103] : memref<16xi32, #tpu.memory_space<smem>>
    %c11_i32_104 = arith.constant 11 : i32
    %c3_i32_105 = arith.constant 3 : i32
    %c0_i32_106 = arith.constant 0 : i32
    %190 = tpu.memref_slice %arg2[%189, %c0_i32_106] : memref<15x128xf32, #tpu.memory_space<any>> -> memref<1x128xf32, #tpu.memory_space<any>>
    %191 = tpu.memref_squeeze %190 : memref<1x128xf32, #tpu.memory_space<any>> -> memref<128xf32, #tpu.memory_space<any>>
    %c0_i32_107 = arith.constant 0 : i32
    %192 = tpu.memref_slice %arg3[%c11_i32_104, %c0_i32_107] : memref<16x128xf32, #tpu.memory_space<any>> -> memref<1x128xf32, #tpu.memory_space<any>>
    %193 = tpu.memref_squeeze %192 : memref<1x128xf32, #tpu.memory_space<any>> -> memref<128xf32, #tpu.memory_space<any>>
    %194 = tpu.memref_slice %arg4[%c3_i32_105] : memref<8x!tpu.dma_semaphore, #tpu.memory_space<semaphore_mem>> -> memref<1x!tpu.dma_semaphore, #tpu.memory_space<semaphore_mem>>
    %195 = tpu.memref_squeeze %194 : memref<1x!tpu.dma_semaphore, #tpu.memory_space<semaphore_mem>> -> memref<!tpu.dma_semaphore, #tpu.memory_space<semaphore_mem>>
    tpu.wait_dma2 semaphore(%195 : memref<!tpu.dma_semaphore, #tpu.memory_space<semaphore_mem>>) src(%191 : memref<128xf32, #tpu.memory_space<any>>) dst(%193 : memref<128xf32, #tpu.memory_space<any>>)
    %c12_108 = arith.constant 12 : index
    %196 = memref.load %arg1[%c12_108] : memref<16xi32, #tpu.memory_space<smem>>
    %c12_i32_109 = arith.constant 12 : i32
    %c4_i32_110 = arith.constant 4 : i32
    %c0_i32_111 = arith.constant 0 : i32
    %197 = tpu.memref_slice %arg2[%196, %c0_i32_111] : memref<15x128xf32, #tpu.memory_space<any>> -> memref<1x128xf32, #tpu.memory_space<any>>
    %198 = tpu.memref_squeeze %197 : memref<1x128xf32, #tpu.memory_space<any>> -> memref<128xf32, #tpu.memory_space<any>>
    %c0_i32_112 = arith.constant 0 : i32
    %199 = tpu.memref_slice %arg3[%c12_i32_109, %c0_i32_112] : memref<16x128xf32, #tpu.memory_space<any>> -> memref<1x128xf32, #tpu.memory_space<any>>
    %200 = tpu.memref_squeeze %199 : memref<1x128xf32, #tpu.memory_space<any>> -> memref<128xf32, #tpu.memory_space<any>>
    %201 = tpu.memref_slice %arg4[%c4_i32_110] : memref<8x!tpu.dma_semaphore, #tpu.memory_space<semaphore_mem>> -> memref<1x!tpu.dma_semaphore, #tpu.memory_space<semaphore_mem>>
    %202 = tpu.memref_squeeze %201 : memref<1x!tpu.dma_semaphore, #tpu.memory_space<semaphore_mem>> -> memref<!tpu.dma_semaphore, #tpu.memory_space<semaphore_mem>>
    tpu.wait_dma2 semaphore(%202 : memref<!tpu.dma_semaphore, #tpu.memory_space<semaphore_mem>>) src(%198 : memref<128xf32, #tpu.memory_space<any>>) dst(%200 : memref<128xf32, #tpu.memory_space<any>>)
    %c13_113 = arith.constant 13 : index
    %203 = memref.load %arg1[%c13_113] : memref<16xi32, #tpu.memory_space<smem>>
    %c13_i32_114 = arith.constant 13 : i32
    %c5_i32_115 = arith.constant 5 : i32
    %c0_i32_116 = arith.constant 0 : i32
    %204 = tpu.memref_slice %arg2[%203, %c0_i32_116] : memref<15x128xf32, #tpu.memory_space<any>> -> memref<1x128xf32, #tpu.memory_space<any>>
    %205 = tpu.memref_squeeze %204 : memref<1x128xf32, #tpu.memory_space<any>> -> memref<128xf32, #tpu.memory_space<any>>
    %c0_i32_117 = arith.constant 0 : i32
    %206 = tpu.memref_slice %arg3[%c13_i32_114, %c0_i32_117] : memref<16x128xf32, #tpu.memory_space<any>> -> memref<1x128xf32, #tpu.memory_space<any>>
    %207 = tpu.memref_squeeze %206 : memref<1x128xf32, #tpu.memory_space<any>> -> memref<128xf32, #tpu.memory_space<any>>
    %208 = tpu.memref_slice %arg4[%c5_i32_115] : memref<8x!tpu.dma_semaphore, #tpu.memory_space<semaphore_mem>> -> memref<1x!tpu.dma_semaphore, #tpu.memory_space<semaphore_mem>>
    %209 = tpu.memref_squeeze %208 : memref<1x!tpu.dma_semaphore, #tpu.memory_space<semaphore_mem>> -> memref<!tpu.dma_semaphore, #tpu.memory_space<semaphore_mem>>
    tpu.wait_dma2 semaphore(%209 : memref<!tpu.dma_semaphore, #tpu.memory_space<semaphore_mem>>) src(%205 : memref<128xf32, #tpu.memory_space<any>>) dst(%207 : memref<128xf32, #tpu.memory_space<any>>)
    %c14_118 = arith.constant 14 : index
    %210 = memref.load %arg1[%c14_118] : memref<16xi32, #tpu.memory_space<smem>>
    %c14_i32_119 = arith.constant 14 : i32
    %c6_i32_120 = arith.constant 6 : i32
    %c0_i32_121 = arith.constant 0 : i32
    %211 = tpu.memref_slice %arg2[%210, %c0_i32_121] : memref<15x128xf32, #tpu.memory_space<any>> -> memref<1x128xf32, #tpu.memory_space<any>>
    %212 = tpu.memref_squeeze %211 : memref<1x128xf32, #tpu.memory_space<any>> -> memref<128xf32, #tpu.memory_space<any>>
    %c0_i32_122 = arith.constant 0 : i32
    %213 = tpu.memref_slice %arg3[%c14_i32_119, %c0_i32_122] : memref<16x128xf32, #tpu.memory_space<any>> -> memref<1x128xf32, #tpu.memory_space<any>>
    %214 = tpu.memref_squeeze %213 : memref<1x128xf32, #tpu.memory_space<any>> -> memref<128xf32, #tpu.memory_space<any>>
    %215 = tpu.memref_slice %arg4[%c6_i32_120] : memref<8x!tpu.dma_semaphore, #tpu.memory_space<semaphore_mem>> -> memref<1x!tpu.dma_semaphore, #tpu.memory_space<semaphore_mem>>
    %216 = tpu.memref_squeeze %215 : memref<1x!tpu.dma_semaphore, #tpu.memory_space<semaphore_mem>> -> memref<!tpu.dma_semaphore, #tpu.memory_space<semaphore_mem>>
    tpu.wait_dma2 semaphore(%216 : memref<!tpu.dma_semaphore, #tpu.memory_space<semaphore_mem>>) src(%212 : memref<128xf32, #tpu.memory_space<any>>) dst(%214 : memref<128xf32, #tpu.memory_space<any>>)
    %c15_123 = arith.constant 15 : index
    %217 = memref.load %arg1[%c15_123] : memref<16xi32, #tpu.memory_space<smem>>
    %c15_i32_124 = arith.constant 15 : i32
    %c7_i32_125 = arith.constant 7 : i32
    %c0_i32_126 = arith.constant 0 : i32
    %218 = tpu.memref_slice %arg2[%217, %c0_i32_126] : memref<15x128xf32, #tpu.memory_space<any>> -> memref<1x128xf32, #tpu.memory_space<any>>
    %219 = tpu.memref_squeeze %218 : memref<1x128xf32, #tpu.memory_space<any>> -> memref<128xf32, #tpu.memory_space<any>>
    %c0_i32_127 = arith.constant 0 : i32
    %220 = tpu.memref_slice %arg3[%c15_i32_124, %c0_i32_127] : memref<16x128xf32, #tpu.memory_space<any>> -> memref<1x128xf32, #tpu.memory_space<any>>
    %221 = tpu.memref_squeeze %220 : memref<1x128xf32, #tpu.memory_space<any>> -> memref<128xf32, #tpu.memory_space<any>>
    %222 = tpu.memref_slice %arg4[%c7_i32_125] : memref<8x!tpu.dma_semaphore, #tpu.memory_space<semaphore_mem>> -> memref<1x!tpu.dma_semaphore, #tpu.memory_space<semaphore_mem>>
    %223 = tpu.memref_squeeze %222 : memref<1x!tpu.dma_semaphore, #tpu.memory_space<semaphore_mem>> -> memref<!tpu.dma_semaphore, #tpu.memory_space<semaphore_mem>>
    tpu.wait_dma2 semaphore(%223 : memref<!tpu.dma_semaphore, #tpu.memory_space<semaphore_mem>>) src(%219 : memref<128xf32, #tpu.memory_space<any>>) dst(%221 : memref<128xf32, #tpu.memory_space<any>>)
    return
  }
}

</mosaic_0001>

<bundles_post_ra>
// kernel: tpu_custom_call.1
= control target key start
LH: loop header
LB: loop body
LE: loop exit
PB: predicated region body
PF: predicated region fallthrough
CT: control target
= control target key end

     0   :  { %s714_s0 = inlined_call_operand.hbm [shape: s32[16], index: 0, kind: input, shape index: {}]   ;;  %s715_s1 = inlined_call_operand.hbm [shape: f32[15,128], index: 1, kind: input, shape index: {}]   ;;  %s716_s2 = inlined_call_operand.hbm [shape: f32[16,128], index: 2, kind: output, shape index: {}]  }
   0x1   :  { %s489_s11 = scalar_lea.hbm %s714_s0, 16 }
   0x2   :  { %p490_p0 = scmp.ne.s32.totalorder %s714_s0, %s489_s11  ;;  %p493_p1 = scmp.lt.u32.totalorder %s489_s11, %s714_s0 }
   0x4   :  { %p495_p2 = pnand %p493_p1, %p490_p0 }
   0x6   :  { %498 = shalt.err (!%p495_p2)  }
   0x7   :  { %s533_s16 = smov [#allocation4]  }
   0x8   :  { %8 = dma.hbm_to_smem %s714_s0, 16, %s533_s16, [#allocation3] }
   0x9   :  { %499 = dma.done.wait [#allocation3], 16 }
   0xa   :  { %500 = vsyncadd [#allocation3], 4294967280 }
   0xb   :  { %10 = sfence }
   0xc   :  { %s11_s19 = sld [smem:[#allocation4]]  ;;  %s534_s24 = smov [#allocation2]  }
   0xd   :  { %s535_s25 = smov [#allocation5]   ;;  %s536_s26 = smov 0  }
   0xe   :  { %s30_s3 = scalar_lea.hbm %s716_s2, 16  ;;  %s537_s8 = smov [#allocation2 + $0x1]  }
   0xf   :  { %s538_s9 = smov [#allocation7]   ;;  %s48_s13 = scalar_lea.hbm %s716_s2, 32 }
  0x10   :  { %s539_s18 = smov [#allocation2 + $0x2]   ;;  %s541_s0 = smov [#allocation2 + $0x3]  }
  0x11   :  { %s542_s30 = smov [#allocation11]   ;;  %s84_s6 = scalar_lea.hbm %s716_s2, 64 }
  0x12   :  { %s424_s20 = sshll.u32 %s11_s19, 4  ;;  %s540_s19 = smov [#allocation9]  }
  0x13   :  { %s13_s23 = scalar_lea.hbm %s715_s1, %s424_s20  ;;  %s543_s12 = smov [#allocation2 + $0x4]  }
  0x14   :  { %26 = dma.general %s13_s23, 16, %s716_s2, %s534_s24, %s535_s25, [#allocation6], %s536_s26, 0  }
  0x15   :  { %s425_s29 = sld [smem:[#allocation4 + $0x1]]  ;;  %s66_s23 = scalar_lea.hbm %s716_s2, 48 }
  0x16   :  { %s550_s21 = smov [#allocation19]  }
  0x1b   :  { %s426_s4 = sshll.u32 %s425_s29, 4 }
  0x1c   :  { %s29_s7 = scalar_lea.hbm %s715_s1, %s426_s4 }
  0x1d   :  { %44 = dma.general %s29_s7, 16, %s30_s3, %s537_s8, %s538_s9, [#allocation8], %s536_s26, 0  }
  0x1e   :  { %s427_s10 = sld [smem:[#allocation4 + $0x2]]  ;;  %s548_s9 = smov [#allocation17]  }
  0x24   :  { %s428_s14 = sshll.u32 %s427_s10, 4 }
  0x25   :  { %s47_s17 = scalar_lea.hbm %s715_s1, %s428_s14 }
  0x26   :  { %62 = dma.general %s47_s17, 16, %s48_s13, %s539_s18, %s540_s19, [#allocation10], %s536_s26, 0  }
  0x27   :  { %s429_s20 = sld [smem:[#allocation4 + $0x3]]  ;;  %s544_s13 = smov [#allocation13]  }
  0x28   :  { %s102_s17 = scalar_lea.hbm %s716_s2, 80 }
  0x2d   :  { %s430_s25 = sshll.u32 %s429_s20, 4  ;;  %s549_s20 = smov [#allocation2 + $0x7]  }
  0x2e   :  { %s65_s29 = scalar_lea.hbm %s715_s1, %s430_s25  ;;  %s546_s25 = smov [#allocation15]  }
  0x2f   :  { %80 = dma.general %s65_s29, 16, %s66_s23, %s541_s0, %s542_s30, [#allocation12], %s536_s26, 0  }
  0x30   :  { %s431_s3 = sld [smem:[#allocation4 + $0x4]]  ;;  %s545_s23 = smov [#allocation2 + $0x5]  }
  0x31   :  { %s120_s30 = scalar_lea.hbm %s716_s2, 96 }
  0x36   :  { %s432_s7 = sshll.u32 %s431_s3, 4 }
  0x37   :  { %s83_s11 = scalar_lea.hbm %s715_s1, %s432_s7  ;;  %s547_s7 = smov [#allocation2 + $0x6]  }
  0x38   :  { %98 = dma.general %s83_s11, 16, %s84_s6, %s543_s12, %s544_s13, [#allocation14], %s536_s26, 0  }
  0x39   :  { %s433_s14 = sld [smem:[#allocation4 + $0x5]] }
  0x3f   :  { %s434_s19 = sshll.u32 %s433_s14, 4  ;;  %s138_s14 = scalar_lea.hbm %s716_s2, 112 }
  0x40   :  { %s101_s22 = scalar_lea.hbm %s715_s1, %s434_s19 }
  0x41   :  { %116 = dma.general %s101_s22, 16, %s102_s17, %s545_s23, %s546_s25, [#allocation16], %s536_s26, 0  }
  0x42   :  { %s435_s27 = sld [smem:[#allocation4 + $0x6]] }
  0x48   :  { %s436_s3 = sshll.u32 %s435_s27, 4 }
  0x49   :  { %s119_s6 = scalar_lea.hbm %s715_s1, %s436_s3 }
  0x4a   :  { %134 = dma.general %s119_s6, 16, %s120_s30, %s547_s7, %s548_s9, [#allocation18], %s536_s26, 0  }
  0x4b   :  { %s437_s10 = sld [smem:[#allocation4 + $0x7]] }
  0x51   :  { %s438_s15 = sshll.u32 %s437_s10, 4 }
  0x52   :  { %s137_s19 = scalar_lea.hbm %s715_s1, %s438_s15 }
  0x53   :  { %152 = dma.general %s137_s19, 16, %s138_s14, %s549_s20, %s550_s21, [#allocation20], %s536_s26, 0  }
  0x54   :  { %501 = dma.done.wait [#allocation2], 16 }
  0x55   :  { %502 = vsyncadd [#allocation2], 4294967280  ;;  %s439_s22 = sld [smem:[#allocation4 + $0x8]]  ;;  %s159_s28 = scalar_lea.hbm %s716_s2, 128 }
  0x56   :  { %s551_s5 = smov [#allocation21]  }
  0x5b   :  { %s440_s29 = sshll.u32 %s439_s22, 4 }
  0x5c   :  { %s158_s4 = scalar_lea.hbm %s715_s1, %s440_s29 }
  0x5d   :  { %172 = dma.general %s158_s4, 16, %s159_s28, %s534_s24, %s551_s5, [#allocation22], %s536_s26, 0  }
  0x5e   :  { %503 = dma.done.wait [#allocation2 + $0x1], 16 }
  0x5f   :  { %504 = vsyncadd [#allocation2 + $0x1], 4294967280  ;;  %s441_s6 = sld [smem:[#allocation4 + $0x9]]  ;;  %s179_s11 = scalar_lea.hbm %s716_s2, 144 }
  0x60   :  { %s552_s17 = smov [#allocation23]  }
  0x65   :  { %s442_s13 = sshll.u32 %s441_s6, 4 }
  0x66   :  { %s178_s16 = scalar_lea.hbm %s715_s1, %s442_s13 }
  0x67   :  { %192 = dma.general %s178_s16, 16, %s179_s11, %s537_s8, %s552_s17, [#allocation24], %s536_s26, 0  }
  0x68   :  { %505 = dma.done.wait [#allocation2 + $0x2], 16 }
  0x69   :  { %506 = vsyncadd [#allocation2 + $0x2], 4294967280  ;;  %s443_s19 = sld [smem:[#allocation4 + $0xa]]  ;;  %s199_s22 = scalar_lea.hbm %s716_s2, 160 }
  0x6a   :  { %s553_s30 = smov [#allocation25]  }
  0x6f   :  { %s444_s25 = sshll.u32 %s443_s19, 4 }
  0x70   :  { %s198_s29 = scalar_lea.hbm %s715_s1, %s444_s25 }
  0x71   :  { %212 = dma.general %s198_s29, 16, %s199_s22, %s539_s18, %s553_s30, [#allocation26], %s536_s26, 0  }
  0x72   :  { %507 = dma.done.wait [#allocation2 + $0x3], 16 }
  0x73   :  { %508 = vsyncadd [#allocation2 + $0x3], 4294967280  ;;  %s445_s3 = sld [smem:[#allocation4 + $0xb]]  ;;  %s219_s5 = scalar_lea.hbm %s716_s2, 176 }
  0x74   :  { %s554_s13 = smov [#allocation27]  }
  0x79   :  { %s446_s6 = sshll.u32 %s445_s3, 4 }
  0x7a   :  { %s218_s11 = scalar_lea.hbm %s715_s1, %s446_s6 }
  0x7b   :  { %232 = dma.general %s218_s11, 16, %s219_s5, %s541_s0, %s554_s13, [#allocation28], %s536_s26, 0  }
  0x7c   :  { %509 = dma.done.wait [#allocation2 + $0x4], 16 }
  0x7d   :  { %510 = vsyncadd [#allocation2 + $0x4], 4294967280  ;;  %s447_s14 = sld [smem:[#allocation4 + $0xc]]  ;;  %s239_s16 = scalar_lea.hbm %s716_s2, 192 }
  0x7e   :  { %s555_s22 = smov [#allocation29]  }
  0x83   :  { %s448_s17 = sshll.u32 %s447_s14, 4 }
  0x84   :  { %s238_s21 = scalar_lea.hbm %s715_s1, %s448_s17 }
  0x85   :  { %252 = dma.general %s238_s21, 16, %s239_s16, %s543_s12, %s555_s22, [#allocation30], %s536_s26, 0  }
  0x86   :  { %511 = dma.done.wait [#allocation2 + $0x5], 16 }
  0x87   :  { %512 = vsyncadd [#allocation2 + $0x5], 4294967280  ;;  %s449_s25 = sld [smem:[#allocation4 + $0xd]]  ;;  %s259_s28 = scalar_lea.hbm %s716_s2, 208 }
  0x88   :  { %s556_s4 = smov [#allocation31]  }
  0x8d   :  { %s450_s29 = sshll.u32 %s449_s25, 4 }
  0x8e   :  { %s258_s8 = scalar_lea.hbm %s715_s1, %s450_s29 }
  0x8f   :  { %272 = dma.general %s258_s8, 16, %s259_s28, %s545_s23, %s556_s4, [#allocation32], %s536_s26, 0  }
  0x90   :  { %513 = dma.done.wait [#allocation2 + $0x6], 16 }
  0x91   :  { %514 = vsyncadd [#allocation2 + $0x6], 4294967280  ;;  %s451_s5 = sld [smem:[#allocation4 + $0xe]]  ;;  %s279_s9 = scalar_lea.hbm %s716_s2, 224 }
  0x92   :  { %s557_s18 = smov [#allocation33]  }
  0x97   :  { %s452_s10 = sshll.u32 %s451_s5, 4 }
  0x98   :  { %s278_s14 = scalar_lea.hbm %s715_s1, %s452_s10 }
  0x99   :  { %292 = dma.general %s278_s14, 16, %s279_s9, %s547_s7, %s557_s18, [#allocation34], %s536_s26, 0  }
  0x9a   :  { %515 = dma.done.wait [#allocation2 + $0x7], 16 }
  0x9b   :  { %516 = vsyncadd [#allocation2 + $0x7], 4294967280  ;;  %s453_s15 = sld [smem:[#allocation4 + $0xf]]  ;;  %s299_s17 = scalar_lea.hbm %s716_s2, 240 }
  0x9c   :  { %s558_s25 = smov [#allocation35]  }
  0xa1   :  { %s454_s19 = sshll.u32 %s453_s15, 4 }
  0xa2   :  { %s298_s22 = scalar_lea.hbm %s715_s1, %s454_s19 }
  0xa3   :  { %312 = dma.general %s298_s22, 16, %s299_s17, %s549_s20, %s558_s25, [#allocation36], %s536_s26, 0  }
  0xa4   :  { %517 = dma.done.wait [#allocation2], 16 }
  0xa5   :  { %518 = vsyncadd [#allocation2], 4294967280 }
  0xa6   :  { %519 = dma.done.wait [#allocation2 + $0x1], 16 }
  0xa7   :  { %520 = vsyncadd [#allocation2 + $0x1], 4294967280 }
  0xa8   :  { %521 = dma.done.wait [#allocation2 + $0x2], 16 }
  0xa9   :  { %522 = vsyncadd [#allocation2 + $0x2], 4294967280 }
  0xaa   :  { %523 = dma.done.wait [#allocation2 + $0x3], 16 }
  0xab   :  { %524 = vsyncadd [#allocation2 + $0x3], 4294967280 }
  0xac   :  { %525 = dma.done.wait [#allocation2 + $0x4], 16 }
  0xad   :  { %526 = vsyncadd [#allocation2 + $0x4], 4294967280 }
  0xae   :  { %527 = dma.done.wait [#allocation2 + $0x5], 16 }
  0xaf   :  { %528 = vsyncadd [#allocation2 + $0x5], 4294967280 }
  0xb0   :  { %529 = dma.done.wait [#allocation2 + $0x6], 16 }
  0xb1   :  { %530 = vsyncadd [#allocation2 + $0x6], 4294967280 }
  0xb2   :  { %531 = dma.done.wait [#allocation2 + $0x7], 16 }
  0xb3   :  { %532 = vsyncadd [#allocation2 + $0x7], 4294967280 }
  0xb4   :  { %337 = vsyncmov [#allocation2] }
  0xb7   :  { %s338_s1 = vpop.sfrf %337 }
  0xb8   :  { %p455_p3 = scmp.ne.s32.totalorder %s338_s1, 0 }
  0xba   :  { %342 = shalt.err (%p455_p3)  }
  0xbb   :  { %344 = vsyncmov [#allocation2 + $0x1] }
  0xbe   :  { %s345_s2 = vpop.sfrf %344 }
  0xbf   :  { %p456_p4 = scmp.ne.s32.totalorder %s345_s2, 0 }
  0xc1   :  { %349 = shalt.err (%p456_p4)  }
  0xc2   :  { %351 = vsyncmov [#allocation2 + $0x2] }
  0xc5   :  { %s352_s26 = vpop.sfrf %351 }
  0xc6   :  { %p457_p5 = scmp.ne.s32.totalorder %s352_s26, 0 }
  0xc8   :  { %356 = shalt.err (%p457_p5)  }
  0xc9   :  { %358 = vsyncmov [#allocation2 + $0x3] }
  0xcc   :  { %s359_s7 = vpop.sfrf %358 }
  0xcd   :  { %p458_p6 = scmp.ne.s32.totalorder %s359_s7, 0 }
  0xcf   :  { %363 = shalt.err (%p458_p6)  }
  0xd0   :  { %365 = vsyncmov [#allocation2 + $0x4] }
  0xd3   :  { %s366_s20 = vpop.sfrf %365 }
  0xd4   :  { %p459_p7 = scmp.ne.s32.totalorder %s366_s20, 0 }
  0xd6   :  { %370 = shalt.err (%p459_p7)  }
  0xd7   :  { %372 = vsyncmov [#allocation2 + $0x5] }
  0xda   :  { %s373_s0 = vpop.sfrf %372 }
  0xdb   :  { %p460_p8 = scmp.ne.s32.totalorder %s373_s0, 0 }
  0xdd   :  { %377 = shalt.err (%p460_p8)  }
  0xde   :  { %379 = vsyncmov [#allocation2 + $0x6] }
  0xe1   :  { %s380_s27 = vpop.sfrf %379 }
  0xe2   :  { %p461_p9 = scmp.ne.s32.totalorder %s380_s27, 0 }
  0xe4   :  { %384 = shalt.err (%p461_p9)  }
  0xe5   :  { %386 = vsyncmov [#allocation2 + $0x7] }
  0xe8   :  { %s387_s28 = vpop.sfrf %386 }
  0xe9   :  { %p462_p10 = scmp.ne.s32.totalorder %s387_s28, 0 }
  0xeb   :  { %391 = shalt.err (%p462_p10)  }

</bundles_post_ra>
